<compile_context>
chip_gen: v7x
topology: tpu7x:2x2x1
jax: 0.10.0
libtpu: 0.0.40
codegen_flags: <defaults>
</compile_context>

<pallas_src>
import functools

import jax
import jax.numpy as jnp
from jax.experimental import pallas as pl
from jax.experimental.pallas import tpu as pltpu

EPS = 1e-8


def _vn_leaky_relu_kernel(x_ref, w_ref, o_ref, *, negative_slope, precision):
    # x_ref / o_ref: (1, 3, C, TN)   w_ref: (C, C)  (nn.Linear weight, [out, in])
    ns = negative_slope
    w = w_ref[...]          # native dtype straight into the MXU (bf16 stays bf16)

    x0 = x_ref[0, 0]        # (C, TN)
    x1 = x_ref[0, 1]
    x2 = x_ref[0, 2]

    # d_v = W @ x_v : three small matmuls, f32 accumulation.  No lane-concat
    # temporaries (they cost extra tile-sized VMEM round trips on a kernel whose
    # binding slot is vector load/store).
    mm = functools.partial(jnp.dot, preferred_element_type=jnp.float32,
                           precision=precision)
    d0 = mm(w, x0)
    d1 = mm(w, x1)
    d2 = mm(w, x2)

    # Elementwise epilogue in f32 (mandatory on v5e's VPU).
    x0f = x0.astype(jnp.float32)
    x1f = x1.astype(jnp.float32)
    x2f = x2.astype(jnp.float32)

    dot = x0f * d0 + x1f * d1 + x2f * d2      # <x, d>  per (c, n)
    dns = d0 * d0 + d1 * d1 + d2 * d2         # |d|^2   per (c, n)

    # out = x - (1-ns) * where(dot >= 0, 0, dot / (dns + EPS)) * d
    # Exact divide (matches PyTorch); negligible cost on an HBM-bound kernel.
    coef = dot / (dns + EPS)
    s = jnp.where(dot >= 0.0, 0.0, (1.0 - ns) * coef)

    o_ref[0, 0] = (x0f - s * d0).astype(o_ref.dtype)
    o_ref[0, 1] = (x1f - s * d1).astype(o_ref.dtype)
    o_ref[0, 2] = (x2f - s * d2).astype(o_ref.dtype)


def _pick_tn(n, c, itemsize, batch, max_lane_tile, vmem_budget_bytes):
    """Lane tile chooser for n % 128 == 0.

    Largest multiple of 128 dividing n that (a) keeps the double-buffered
    input+output blocks within vmem_budget_bytes, (b) is <= max_lane_tile, and
    (c) leaves at least 2 total grid steps (megacore / DMA pipelining) when a
    smaller divisor allows it.
    """
    assert n % 128 == 0 and n >= 128
    per_lane = 4 * 3 * c * itemsize            # 2x-buffered input + 2x-buffered output
    cap = max(128, (vmem_budget_bytes // per_lane) // 128 * 128)
    cap = min(cap, max_lane_tile)
    cands = [m for m in range(128, n + 1, 128) if n % m == 0 and m <= cap]
    if not cands:
        cands = [128]
    tn = cands[-1]
    if batch * (n // tn) < 2:
        for m in reversed(cands):
            if batch * (n // m) >= 2:
                tn = m
                break
    return tn


def vn_leaky_relu_b3cn(x, w, negative_slope=0.2, *, max_lane_tile=2048,
                       vmem_block_budget_bytes=24 * 1024 * 1024, precision=None):
    """Native-layout entry point (hot path).

    x: [B, 3, C, N], w: [C, C] (nn.Linear(C, C, bias=False).weight, [out, in]).
    Returns [B, 3, C, N].
    """
    B, V, C, N = x.shape
    assert V == 3, "vector axis must have size 3"
    assert w.shape == (C, C)
    itemsize = jnp.dtype(x.dtype).itemsize

    # Keep output stores lane-dense (unmasked vst) whenever possible.
    if N % 128 == 0:
        x_run, n_run = x, N
    elif N < 128:
        # Tiny N: single full-extent lane block (masked stores; not the hot path).
        x_run, n_run = x, N
    else:
        # Ragged large N: pad to the next multiple of 128.  Padded columns are
        # zeros -> d=0, dot=0 -> output 0; sliced off below.
        pad = (-N) % 128
        x_run = jnp.pad(x, ((0, 0), (0, 0), (0, 0), (0, pad)))
        n_run = N + pad

    if n_run % 128 == 0:
        tn = _pick_tn(n_run, C, itemsize, B, max_lane_tile, vmem_block_budget_bytes)
    else:
        tn = n_run
    grid = (B, n_run // tn)

    kernel = functools.partial(_vn_leaky_relu_kernel,
                               negative_slope=float(negative_slope),
                               precision=precision)

    block_bytes = 3 * C * tn * itemsize
    w_bytes = C * C * jnp.dtype(w.dtype).itemsize
    # Actual VMEM need: double-buffered in + out blocks + resident weight, plus
    # headroom for compiler-internal scratch.  Capped well under v7x's 64 MiB.
    vmem_limit = int(min(max(4 * block_bytes + w_bytes + (8 << 20), 16 << 20), 48 << 20))

    cost = pl.CostEstimate(
        flops=int(6 * B * C * C * n_run + 20 * B * C * n_run),
        transcendentals=0,
        bytes_accessed=int(2 * 3 * B * C * n_run * itemsize + w_bytes),
    )

    out = pl.pallas_call(
        kernel,
        out_shape=jax.ShapeDtypeStruct((B, V, C, n_run), x.dtype),
        grid=grid,
        in_specs=[
            # NOTE: if profiles show exposed input DMA at small C, deepen the
            # prefetch with pipeline_mode=pl.Buffered(3) on this spec.
            pl.BlockSpec((1, V, C, tn), lambda b, n: (b, 0, 0, n)),
            pl.BlockSpec((C, C), lambda b, n: (0, 0)),      # weight stays resident
        ],
        out_specs=pl.BlockSpec((1, V, C, tn), lambda b, n: (b, 0, 0, n)),
        compiler_params=pltpu.CompilerParams(
            dimension_semantics=("parallel", "parallel"),
            vmem_limit_bytes=vmem_limit,
        ),
        cost_estimate=cost,
    )(x_run, w)

    if n_run != N:
        out = out[..., :N]
    return out


def vn_leaky_relu(x, w, negative_slope=0.2, **kwargs):
    """PyTorch-layout compatibility wrapper.  x: [B, C, 3, N(, ...)], w: [C, C].

    NOTE: the two transposes below each cost a full extra HBM read+write on an
    HBM-bound op; in a real model keep activations in [B, 3, C, N] and call
    vn_leaky_relu_b3cn directly.
    """
    orig_shape = x.shape
    B, C, V = x.shape[:3]
    x4 = x.reshape(B, C, V, -1)                       # fold trailing sample dims
    xt = jnp.transpose(x4, (0, 2, 1, 3))              # [B, 3, C, N]
    out = vn_leaky_relu_b3cn(xt, w, negative_slope, **kwargs)
    return jnp.transpose(out, (0, 2, 1, 3)).reshape(orig_shape)


def vn_leaky_relu_ref(x, w, negative_slope=0.2, precision=None):
    """Pure-JAX reference matching the PyTorch module (share_nonlinearity=False)."""
    d = jnp.einsum("oc,bcvn->bovn", w, x, precision=precision)
    dotprod = jnp.sum(x * d, axis=2, keepdims=True)
    mask = (dotprod >= 0).astype(x.dtype)
    dns = jnp.sum(d * d, axis=2, keepdims=True)
    ns = negative_slope
    return ns * x + (1 - ns) * (mask * x + (1 - mask) * (x - dotprod / (dns + EPS) * d))


if __name__ == "__main__":
    base_key = jax.random.PRNGKey(0)
    # HIGHEST precision on both sides so the kernel-vs-reference check is tight
    # (production default is precision=None -> fastest native MXU mode).
    HIGH = jax.lax.Precision.HIGHEST

    def run_case(B, C, N, tol=3e-4):
        kx, kw = jax.random.split(jax.random.fold_in(base_key, 1000 * C + N))
        x = jax.random.normal(kx, (B, C, 3, N), dtype=jnp.float32)
        # Deterministic nn.Linear(C, C, bias=False)-style init.
        bound = 1.0 / (C ** 0.5)
        w = jax.random.uniform(kw, (C, C), dtype=jnp.float32, minval=-bound, maxval=bound)

        out = jax.block_until_ready(
            vn_leaky_relu(x, w, negative_slope=0.2, precision=HIGH))
        ref = vn_leaky_relu_ref(x, w, negative_slope=0.2, precision=HIGH)
        assert out.shape == (B, C, 3, N)
        err = float(jnp.max(jnp.abs(out - ref)))
        assert jnp.allclose(out, ref, atol=tol, rtol=tol), \
            f"mismatch B={B} C={C} N={N} max|err|={err}"

    # Small spec-like shape: N < 128 -> single full-extent lane block.
    run_case(2, 4, 16)
    # 128-aligned N -> lane-dense tiles (tn=256, grid (2, 1)).
    run_case(2, 8, 256)
    # B=1: tn chooser keeps >= 2 grid steps for megacore (tn=128, grid (1, 3)).
    run_case(1, 8, 384)
    # Ragged N > 128 -> padded to 256 in the wrapper, sliced back after.
    run_case(2, 4, 200)

    print("KERNEL_OK")
</pallas_src>

<mosaic_0001>
module attributes {stable_mosaic.version = 11 : i64} {
  func.func @_vn_leaky_relu_kernel(%arg0: i32, %arg1: i32, %arg2: memref<1x3x4x16xf32, #tpu.memory_space<vmem>>, %arg3: memref<4x4xf32, #tpu.memory_space<vmem>>, %arg4: memref<1x3x4x16xf32, #tpu.memory_space<vmem>>) attributes {dimension_semantics = [#tpu.dimension_semantics<parallel>, #tpu.dimension_semantics<parallel>], iteration_bounds = array<i64: 2, 1>, scalar_prefetch = 0 : i64, scratch_operands = 0 : i64, tpu.core_type = #tpu.core_type<tc>, window_params = [{transform_indices = @transform_0, window_bounds = array<i64: 1, 3, 4, 16>}, {pipeline_mode = #tpu.pipeline_mode<synchronous>, transform_indices = @transform_1, window_bounds = array<i64: 4, 4>}, {transform_indices = @transform_2, window_bounds = array<i64: 1, 3, 4, 16>}]} {
    %c0 = arith.constant 0 : index
    %c0_0 = arith.constant 0 : index
    %0 = vector.load %arg3[%c0, %c0_0] : memref<4x4xf32, #tpu.memory_space<vmem>>, vector<4x4xf32>
    %c0_1 = arith.constant 0 : index
    %c0_2 = arith.constant 0 : index
    %c0_3 = arith.constant 0 : index
    %c0_4 = arith.constant 0 : index
    %1 = vector.load %arg2[%c0_1, %c0_2, %c0_3, %c0_4] : memref<1x3x4x16xf32, #tpu.memory_space<vmem>>, vector<1x1x4x16xf32>
    %2 = vector.shape_cast %1 : vector<1x1x4x16xf32> to vector<4x16xf32>
    %c0_5 = arith.constant 0 : index
    %c1 = arith.constant 1 : index
    %c0_6 = arith.constant 0 : index
    %c0_7 = arith.constant 0 : index
    %3 = vector.load %arg2[%c0_5, %c1, %c0_6, %c0_7] : memref<1x3x4x16xf32, #tpu.memory_space<vmem>>, vector<1x1x4x16xf32>
    %4 = vector.shape_cast %3 : vector<1x1x4x16xf32> to vector<4x16xf32>
    %c0_8 = arith.constant 0 : index
    %c2 = arith.constant 2 : index
    %c0_9 = arith.constant 0 : index
    %c0_10 = arith.constant 0 : index
    %5 = vector.load %arg2[%c0_8, %c2, %c0_9, %c0_10] : memref<1x3x4x16xf32, #tpu.memory_space<vmem>>, vector<1x1x4x16xf32>
    %6 = vector.shape_cast %5 : vector<1x1x4x16xf32> to vector<4x16xf32>
    %cst = arith.constant dense<0.000000e+00> : vector<4x16xf32>
    %7 = tpu.matmul %0, %2, %cst {dimension_numbers = #tpu.dot_dimension_numbers<[1], [0], [0], [1], [0, 0, 1, 1], [], []>, precision = #tpu.contract_precision<fp32>} : vector<4x4xf32>, vector<4x16xf32>, vector<4x16xf32> -> vector<4x16xf32>
    %cst_11 = arith.constant dense<0.000000e+00> : vector<4x16xf32>
    %8 = tpu.matmul %0, %4, %cst_11 {dimension_numbers = #tpu.dot_dimension_numbers<[1], [0], [0], [1], [0, 0, 1, 1], [], []>, precision = #tpu.contract_precision<fp32>} : vector<4x4xf32>, vector<4x16xf32>, vector<4x16xf32> -> vector<4x16xf32>
    %cst_12 = arith.constant dense<0.000000e+00> : vector<4x16xf32>
    %9 = tpu.matmul %0, %6, %cst_12 {dimension_numbers = #tpu.dot_dimension_numbers<[1], [0], [0], [1], [0, 0, 1, 1], [], []>, precision = #tpu.contract_precision<fp32>} : vector<4x4xf32>, vector<4x16xf32>, vector<4x16xf32> -> vector<4x16xf32>
    %10 = arith.mulf %2, %7 : vector<4x16xf32>
    %11 = arith.mulf %4, %8 : vector<4x16xf32>
    %12 = arith.addf %10, %11 : vector<4x16xf32>
    %13 = arith.mulf %6, %9 : vector<4x16xf32>
    %14 = arith.addf %12, %13 : vector<4x16xf32>
    %15 = arith.mulf %7, %7 : vector<4x16xf32>
    %16 = arith.mulf %8, %8 : vector<4x16xf32>
    %17 = arith.addf %15, %16 : vector<4x16xf32>
    %18 = arith.mulf %9, %9 : vector<4x16xf32>
    %19 = arith.addf %17, %18 : vector<4x16xf32>
    %cst_13 = arith.constant 9.99999993E-9 : f32
    %20 = vector.broadcast %cst_13 : f32 to vector<4x16xf32>
    %21 = arith.addf %19, %20 : vector<4x16xf32>
    %22 = arith.divf %14, %21 : vector<4x16xf32>
    %cst_14 = arith.constant 0.000000e+00 : f32
    %23 = vector.broadcast %cst_14 : f32 to vector<4x16xf32>
    %24 = arith.cmpf oge, %14, %23 : vector<4x16xf32>
    %cst_15 = arith.constant 8.000000e-01 : f32
    %25 = vector.broadcast %cst_15 : f32 to vector<4x16xf32>
    %26 = arith.mulf %25, %22 : vector<4x16xf32>
    %cst_16 = arith.constant 0.000000e+00 : f32
    %27 = vector.broadcast %cst_16 : f32 to vector<4x16xf32>
    %28 = arith.select %24, %27, %26 : vector<4x16xi1>, vector<4x16xf32>
    %29 = arith.mulf %28, %7 : vector<4x16xf32>
    %30 = arith.subf %2, %29 : vector<4x16xf32>
    %c0_17 = arith.constant 0 : index
    %c0_18 = arith.constant 0 : index
    %c0_19 = arith.constant 0 : index
    %c0_20 = arith.constant 0 : index
    %31 = vector.load %arg4[%c0_17, %c0_18, %c0_19, %c0_20] : memref<1x3x4x16xf32, #tpu.memory_space<vmem>>, vector<1x1x4x16xf32>
    %32 = vector.shape_cast %31 : vector<1x1x4x16xf32> to vector<4x16xf32>
    %33 = vector.shape_cast %30 : vector<4x16xf32> to vector<1x1x4x16xf32>
    tpu.vector_store %arg4[%c0_17, %c0_18, %c0_19, %c0_20], %33 {strides = array<i32>} : memref<1x3x4x16xf32, #tpu.memory_space<vmem>>, vector<1x1x4x16xf32>,
    %34 = arith.mulf %28, %8 : vector<4x16xf32>
    %35 = arith.subf %4, %34 : vector<4x16xf32>
    %c0_21 = arith.constant 0 : index
    %c1_22 = arith.constant 1 : index
    %c0_23 = arith.constant 0 : index
    %c0_24 = arith.constant 0 : index
    %36 = vector.load %arg4[%c0_21, %c1_22, %c0_23, %c0_24] : memref<1x3x4x16xf32, #tpu.memory_space<vmem>>, vector<1x1x4x16xf32>
    %37 = vector.shape_cast %36 : vector<1x1x4x16xf32> to vector<4x16xf32>
    %38 = vector.shape_cast %35 : vector<4x16xf32> to vector<1x1x4x16xf32>
    tpu.vector_store %arg4[%c0_21, %c1_22, %c0_23, %c0_24], %38 {strides = array<i32>} : memref<1x3x4x16xf32, #tpu.memory_space<vmem>>, vector<1x1x4x16xf32>,
    %39 = arith.mulf %28, %9 : vector<4x16xf32>
    %40 = arith.subf %6, %39 : vector<4x16xf32>
    %c0_25 = arith.constant 0 : index
    %c2_26 = arith.constant 2 : index
    %c0_27 = arith.constant 0 : index
    %c0_28 = arith.constant 0 : index
    %41 = vector.load %arg4[%c0_25, %c2_26, %c0_27, %c0_28] : memref<1x3x4x16xf32, #tpu.memory_space<vmem>>, vector<1x1x4x16xf32>
    %42 = vector.shape_cast %41 : vector<1x1x4x16xf32> to vector<4x16xf32>
    %43 = vector.shape_cast %40 : vector<4x16xf32> to vector<1x1x4x16xf32>
    tpu.vector_store %arg4[%c0_25, %c2_26, %c0_27, %c0_28], %43 {strides = array<i32>} : memref<1x3x4x16xf32, #tpu.memory_space<vmem>>, vector<1x1x4x16xf32>,
    return
  }
  func.func @transform_0(%arg0: i32, %arg1: i32) -> (i32, i32, i32, i32) {
    %c0_i32 = arith.constant 0 : i32
    %c0_i32_0 = arith.constant 0 : i32
    %c0_i32_1 = arith.constant 0 : i32
    return %arg0, %c0_i32, %c0_i32_0, %arg1 : i32, i32, i32, i32
  }
  func.func @transform_1(%arg0: i32, %arg1: i32) -> (i32, i32) {
    %c0_i32 = arith.constant 0 : i32
    %c0_i32_0 = arith.constant 0 : i32
    %c0_i32_1 = arith.constant 0 : i32
    return %c0_i32, %c0_i32_0 : i32, i32
  }
  func.func @transform_2(%arg0: i32, %arg1: i32) -> (i32, i32, i32, i32) {
    %c0_i32 = arith.constant 0 : i32
    %c0_i32_0 = arith.constant 0 : i32
    %c0_i32_1 = arith.constant 0 : i32
    return %arg0, %c0_i32, %c0_i32_0, %arg1 : i32, i32, i32, i32
  }
}

</mosaic_0001>

<bundles_post_ra>
// kernel: tpu_custom_call.1
= control target key start
LH: loop header
LB: loop body
LE: loop exit
PB: predicated region body
PF: predicated region fallthrough
CT: control target
= control target key end

     0   :  { %7 = vsyncpa [#allocation3], 0  ;;  %s2441_s0 = inlined_call_operand.hbm [shape: f32[2,3,4,16], index: 0, kind: input, shape index: {}]   ;;  %s2442_s1 = inlined_call_operand.hbm [shape: f32[4,4], index: 1, kind: input, shape index: {}]   ;;  %s2443_s2 = inlined_call_operand.hbm [shape: f32[2,3,4,16], index: 2, kind: output, shape index: {}]  }
   0x1   :  { %9 = vsyncpa [#allocation3 + $0x1], 0 }
   0x2   :  { %10 = vsyncpa [#allocation6], 0 }
   0x3   :  { %11 = vsyncpa [#allocation4], 0 }
   0x4   :  { %13 = vsyncpa [#allocation4 + $0x1], 0  ;;  %s2113_s9 = smov 0   ;;  %s2115_s10 = smov 0  }
   0x5   :  { %s2117_s11 = smov 0   ;;  %s2119_s12 = smov 0  }
   0x6   :  { %s2121_s13 = smov 0   ;;  %s2123_s14 = smov 0  }
   0x7 LB: > { %s1688_s15 = sadd.s32 4294967295, %s2087_s14   ;;  %s1689_s16 = sadd.s32 4294967294, %s2087_s14   ;;  %s2087_s14 = sphi %s2123_s14, %s19_s14   ;;  %s2083_s13 = sphi %s2121_s13, %s2471_s13   ;;  %s2079_s12 = sphi %s2119_s12, %s2470_s12   ;;  %s2075_s11 = sphi %s2117_s11, %s2469_s11   ;;  %s2071_s10 = sphi %s2115_s10, %s2468_s10   ;;  %s2067_s9 = sphi %s2113_s9, %s2467_s9  }
   0x8   : > { %s40_s17 = sadd.s32 1, %s2075_s11  ;;  %p47_p0 = scmp.ne.s32.totalorder %s2075_s11, %s2071_s10 }
   0x9   : > { %p48_p1 = scmp.eq.s32.totalorder %s2087_s14, 0  ;;  %p53_p2 = scmp.ne.s32.totalorder %s2071_s10, %s2067_s9 }
   0xa   : > { %p2151_p3 = scmp.eq.s32.totalorder %s1688_s15, 0  ;;  %p100_p4 = scmp.eq.s32.totalorder %s1688_s15, 1 }
   0xb   : > { %p2155_p5 = por %p48_p1, %p47_p0  ;;  %p106_p6 = scmp.eq.s32.totalorder %s1689_s16, 1 }
   0xc   : > { %s2450_s18 = scalar_select %p2151_p3, 1, 0 }
   0xd   : > { %p2161_p7 = por %p2151_p3, %p53_p2  ;;  %p2165_p8 = por %p100_p4, %p47_p0 }
   0xe   : > { %p2169_p9 = por %p106_p6, %p53_p2  ;;  %p1690_p10 = scmp.ge.s32.totalorder %s2087_s14, 1 }
   0xf   : > { %s2452_s20 = scalar_select %p2161_p7, 1, 0 }
  0x10   : > { %s2453_s21 = scalar_select %p2165_p8, 1, 0 }
  0x11   : > { %s2454_s22 = scalar_select %p2169_p9, 1, 0 }
  0x12   : > { %p113_p11 = scmp.lt.s32.totalorder %s2087_s14, 3  ;;  %s2089_s24 = smov [#allocation5]  }
  0x13   : > { %s126_s25 = sshll.u32 %s2089_s24, 4  ;;  %p1883_p1 = scmp.lt.s32.totalorder %s2087_s14, 2  ;;  %s127_s25 = int_to_ptr.vmem [resolvable:$true] %s126_s25 }
  0x14   : > { %p2176_p13 = pnand %p1690_p10, %p113_p11  ;;  %s31_s28 = sadd.s32 1, %s2083_s13 }
  0x15   : > { %p2185_p4 = pnand %p1883_p1, %p2155_p5  ;;  %p2196_p6 = scmp.ge.s32.totalorder %s31_s28, 2 }
  0x16   : > { %s2455_s23 = scalar_select %p2176_p13, 1, 0 }
  0x17   : > { %p1870_p0 = pneg %p2176_p13  ;;  %s137_s30 = sand.u32 1, %s2075_s11  }
  0x18   : > { %s2456_s26 = scalar_select %p2185_p4, 1, 0 }
  0x19   : > { %p2191_p2 = pnand %p1870_p0, %p2151_p3  ;;  %s1943_s5 = scalar_lea.hbm %s2442_s1, 64 }
  0x1a   : > { %s2458_s29 = scalar_select %p2196_p6, 1, 0 }
  0x1b   : > { %p1944_p5 = scmp.ne.s32.totalorder %s2442_s1, %s1943_s5  ;;  %p1945_p10 = pneg %p2191_p2 }
  0x1c   : > { %p1950_p0 = scmp.lt.u32.totalorder %s1943_s5, %s2442_s1 }
  0x1d   : > { %p1946_p11 = pnand %p1945_p10, %p1944_p5 }
  0x1f   : > { %p1947_p1 = pneg %p1946_p11 }
  0x21   : > { %p1952_p12 = pnand %p1950_p0, %p1947_p1 }
  0x23   : > { %1955 = shalt.err (!%p1952_p12)
}
  0x24   : > { %s1956_s16 = scalar_lea.vmem %s127_s25, 64  ;;  %p1964_p7 = scmp.lt.s32.totalorder %s127_s25, %s127_s25 }
  0x25   : > { %p1957_p9 = scmp.ne.s32.totalorder %s127_s25, %s1956_s16  ;;  %p1965_p13 = scmp.lt.s32.totalorder %s1956_s16, %s1956_s16 }
  0x27   : > { %p1959_p8 = pnand %p1957_p9, %p1945_p10  ;;  %p1966_p4 = por %p1965_p13, %p1964_p7 }
  0x29   : > { %p1960_p3 = pneg %p1959_p8 }
  0x2b   : > { %p1967_p6 = pnand %p1966_p4, %p1960_p3 }
  0x2d   : > { %1970 = shalt.err (!%p1967_p6)
}
  0x2e   : > { %1873 = dma.hbm_to_vmem [thread:$0]  (!%p2191_p2), %s2442_s1, 64, %s127_s25, [#allocation6]  }
  0x2f   : > { %p2459_p9 = scmp.ne.s32.totalorder %s2458_s29, 0  ;;  %s1858_s3 = smul.u32 12, %s137_s30 }
  0x30   : > { %s1859_s5 = smul.u32 192, %s2083_s13  ;;  %s2236_s29 = scalar_lea.sflag [#allocation3], %s137_s30 }
  0x31   : > { %s2473_s28 = smov (%p2459_p9, %s31_s28), 0  ;;  %s141_s8 = scalar_lea.vmem [#allocation2], %s1858_s3 }
  0x32   : > { %s35_s4 = ssub.s32 %s2083_s13, %s2473_s28  ;;  %s2227_s7 = scalar_lea.hbm %s2441_s0, %s1859_s5 }
  0x33   : > { %p38_p3 = scmp.eq.s32.totalorder %s35_s4, 0  ;;  %s149_s15 = sshll.u32 %s141_s8, 4  ;;  %s2234_s15 = int_to_ptr.vmem [resolvable:$true] %s149_s15 }
  0x34   : > { %s1971_s16 = scalar_lea.hbm %s2227_s7, 192  ;;  %p2460_p8 = scmp.ne.s32.totalorder %s2456_s26, 0 }
  0x35   : > { %s2232_s25 = scalar_select %p38_p3, %s2075_s11, %s40_s17  }
  0x36   : > { %p1972_p7 = scmp.ne.s32.totalorder %s2227_s7, %s1971_s16  ;;  %p1973_p12 = pneg %p2460_p8 }
  0x37   : > { %s1976_s3 = scalar_lea.hbm %s2441_s0, 384  ;;  %p1977_p2 = scmp.lt.u32.totalorder %s2227_s7, %s2441_s0 }
  0x38   : > { %p1974_p13 = pnand %p1973_p12, %p1972_p7  ;;  %p1978_p6 = scmp.lt.u32.totalorder %s1976_s3, %s1971_s16 }
  0x39   : > { %p1980_p10 = scmp.lt.u32.totalorder %s1971_s16, %s2227_s7 }
  0x3a   : > { %p1975_p4 = pneg %p1974_p13  ;;  %p1979_p5 = por %p1978_p6, %p1977_p2 }
  0x3c   : > { %p1981_p11 = por %p1980_p10, %p1979_p5 }
  0x3e   : > { %p1982_p1 = pnand %p1981_p11, %p1975_p4 }
  0x40   : > { %1985 = shalt.err (!%p1982_p1)
}
  0x41   : > { %s1986_s17 = scalar_lea.vmem %s2234_s15, 192  ;;  %s2090_s30 = smov [#allocation2]  }
  0x42   : > { %p1987_p0 = scmp.ne.s32.totalorder %s2234_s15, %s1986_s17  ;;  %s1991_s27 = sshll.u32 %s2090_s30, 4  ;;  %s1992_s27 = int_to_ptr.vmem [resolvable:$false] %s1991_s27 }
  0x43   : > { %s1993_s6 = scalar_lea.vmem %s1992_s27, 384  ;;  %p1994_p7 = scmp.lt.s32.totalorder %s2234_s15, %s1992_s27 }
  0x44   : > { %p1989_p9 = pnand %p1987_p0, %p1973_p12  ;;  %p1995_p13 = scmp.lt.s32.totalorder %s1993_s6, %s1986_s17 }
  0x46   : > { %p1990_p3 = pneg %p1989_p9  ;;  %p1996_p2 = por %p1995_p13, %p1994_p7 }
  0x48   : > { %p1997_p6 = pnand %p1996_p2, %p1990_p3 }
  0x4a   : > { %2000 = shalt.err (!%p1997_p6)
}
  0x4b   : > { %s2091_s8 = smov 64   ;;  %s2092_s16 = smov 4  }
  0x4c   : > { %1877 = dma.hbm_to_vmem [thread:$0]  (!%p2460_p8), %s2227_s7, 192, %s2234_s15, %s2236_s29, %s2091_s8, %s2091_s8, %s2092_s16  }
  0x4d   : > { %p2461_p12 = scmp.ne.s32.totalorder %s2455_s23, 0 }
  0x4e   : > { %s2267_s19 = sand.u32 (!%p2461_p12), 1, %s2071_s10   ;;  %p2462_p4 = scmp.ne.s32.totalorder (!%p2461_p12), %s2452_s20, 0 }
  0x4f   : > { %161 = sbr.rel (%p2461_p12) target bundleno = 419 (0x1a3), region = 28  ;;  %s164_s3 = scalar_lea.sflag (!%p2461_p12), [#allocation3], %s2267_s19 }
  0x50   : > { %s1860_s24 = smul.u32 (!%p2461_p12), 12, %s2267_s19 }
  0x52   : > { %s167_s4 = scalar_lea.vmem (!%p2461_p12), [#allocation2], %s1860_s24 }
  0x56   : > { %2054 = dma.done.wait (%p2462_p4), %s164_s3, 192  }
  0x57   : > { %2056 = vsyncadd (%p2462_p4), %s164_s3, 4294967104  ;;  %p2463_p8 = scmp.ne.s32.totalorder %s2450_s18, 0 }
  0x59   : > { %2058 = dma.done.wait (%p2463_p8), [#allocation6], 64  }
  0x5a   : > { %2060 = vsyncadd (%p2463_p8), [#allocation6], 4294967232  ;;  %v2093_v0 = vmov 0.0   ;;  %vm2094_vm0 = vmmov 0   ;;  %vm202_vm1 = vcmask 1043456   ;;  %vm198_vm2 = vcmask 31744  }
  0x5b   : > { %1754 = vmatprep.subr.mxu0 %v2093_v0  ;;  %1756 = vmatprep.mubr.msk.f32.mxu0 %vm2094_vm0, %v2093_v0  ;;  %v2287_v1 = vld [vmem:[%s167_s4] sm:$0xf]  ;;  %v192_v2 = vld [vmem:[#allocation5] sm:$0xf]  ;;  %v2296_v9 = vld [vmem:[%s167_s4 + $0x8] sm:$0xf] }
  0x5c   : > { %1739 = vmatprep.subr.mxu1 %v2093_v0  ;;  %1741 = vmatprep.mubr.msk.f32.mxu1 %vm2094_vm0, %v2093_v0  ;;  %v204_v3 = vsel %vm202_vm1, %v2287_v1, 0  ;;  %v200_v4 = vsel %vm198_vm2, %v192_v2, 0  ;;  %v1102_v12 = vsel %vm202_vm1, %v2296_v9, 0  ;;  %v2305_v13 = vld [vmem:[%s167_s4 + $0x4] sm:$0xf]  ;;  %s1861_s18 = smul.u32 192, %s2079_s12 }
  0x5d   : > { %v207_v5 = vand.u32 4294901760, %v204_v3  ;;  %v2291_v6 = vand.u32 4294901760, %v200_v4  ;;  %v2313_v18 = vand.u32 4294901760, %v1102_v12  ;;  %v653_v19 = vsel %vm202_vm1, %v2305_v13, 0  ;;  %s191_s20 = scalar_lea.vmem [#allocation7], %s1860_s24  ;;  %s1579_s12 = scalar_lea.sflag [#allocation4], %s2267_s19 }
  0x5e   : > { %v656_v20 = vand.u32 4294901760, %v653_v19  ;;  %s1593_s23 = sshll.u32 %s191_s20, 4  ;;  %vm1568_vm4 = vcmask 125952   ;;  %s2387_s15 = scalar_lea.hbm %s2443_s2, %s1861_s18  ;;  %s2389_s23 = int_to_ptr.vmem [resolvable:$true] %s1593_s23 }
  0x5f   : > { %v284_v7 = vsub.f32 %v204_v3, %v207_v5  ;;  %1755 = vmatpush3.msra.mxu0 %v207_v5  ;;  %v2294_v8 = vsub.f32 %v200_v4, %v2291_v6  ;;  %1740 = vmatpush3.msra.mxu1 %v207_v5  ;;  %v1182_v21 = vsub.f32 %v1102_v12, %v2313_v18  ;;  %s2001_s29 = scalar_lea.vmem %s2389_s23, 192  ;;  %p2464_p10 = scmp.ne.s32.totalorder %s2453_s21, 0 }
  0x60   : > { %1744 = vmatprep.subr.mxu1 %v2093_v0  ;;  %1759 = vmatprep.subr.mxu0 %v2093_v0  ;;  %v733_v22 = vsub.f32 %v653_v19, %v656_v20  ;;  %p2002_p5 = scmp.ne.s32.totalorder %s2389_s23, %s2001_s29  ;;  %s2095_s5 = smov [#allocation7]  }
  0x61   : > { %v2301_v10 = vand.u32 4294901760, %v2294_v8  ;;  %v285_v11 = vand.u32 4294901760, %v284_v7  ;;  %v1183_v23 = vand.u32 4294901760, %v1182_v21  ;;  %s2005_s17 = sshll.u32 %s2095_s5, 4  ;;  %s2006_s17 = int_to_ptr.vmem [resolvable:$false] %s2005_s17 }
  0x62   : > { %v734_v24 = vand.u32 4294901760, %v733_v22  ;;  %p2003_p11 = pnand %p2002_p5, %p2464_p10  ;;  %s2007_s30 = scalar_lea.vmem %s2006_s17, 384 }
  0x63   : > { %1757 = vmatmul.mubr.f32.vlgmr.msra.gmra.mrb[0].mxu0 %v2301_v10  ;;  %v275_v14 = vsub.f32 %v2294_v8, %v2301_v10  ;;  %v286_v15 = vsub.f32 %v284_v7, %v285_v11  ;;  %v1184_v25 = vsub.f32 %v1182_v21, %v1183_v23  ;;  %p2008_p0 = scmp.lt.s32.totalorder %s2389_s23, %s2006_s17  ;;  %p2009_p9 = scmp.lt.s32.totalorder %s2007_s30, %s2001_s29 }
  0x64   : > { %1760 = vmatpush3.msra.mxu0 %v285_v11  ;;  %1761 = vmatprep.mubr.msk.f32.mxu0 %vm2094_vm0, %v2093_v0  ;;  %v735_v26 = vsub.f32 %v733_v22, %v734_v24  ;;  %p2004_p1 = pneg %p2003_p11 }
  0x65   : > { %v276_v16 = vand.u32 4294901760, %v275_v14  ;;  %v287_v17 = vand.u32 4294901760, %v286_v15  ;;  %1764 = vmatprep.subr.mxu0 %v2093_v0  ;;  %v1185_v27 = vand.u32 4294901760, %v1184_v25  ;;  %p2010_p3 = por %p2009_p9, %p2008_p0 }
  0x66   : > { %v736_v28 = vand.u32 4294901760, %v735_v26 }
  0x67   : > { %1742 = vmatmul.mubr.f32.vlgmr.msra.gmra.mrb[0].mxu1 %v276_v16  ;;  %p2011_p7 = pnand %p2010_p3, %p2004_p1 }
  0x68   : > { %1745 = vmatpush3.msra.mxu1 %v287_v17  ;;  %1746 = vmatprep.mubr.msk.f32.mxu1 %vm2094_vm0, %v2093_v0 }
  0x69   : > { %1749 = vmatprep.subr.mxu1 %v2093_v0 }
  0x6b   : > { %1762 = vmatmul.mubr.f32.vlgmr.msra.gmra.mrb[0].mxu0 %v2291_v6 }
  0x6c   : > { %1765 = vmatpush3.msra.mxu0 %v207_v5  ;;  %1766 = vmatprep.mubr.msk.f32.mxu0 %vm2094_vm0, %v2093_v0 }
  0x6d   : > { %1799 = vmatprep.subr.mxu0 %v2093_v0 }
  0x6f   : > { %1747 = vmatmul.mubr.f32.vlgmr.msra.gmra.mrb[0].mxu1 %v2291_v6 }
  0x70   : > { %1750 = vmatpush3.msra.mxu1 %v284_v7  ;;  %1751 = vmatprep.mubr.msk.f32.mxu1 %vm2094_vm0, %v2093_v0 }
  0x71   : > { %1769 = vmatprep.subr.mxu1 %v2093_v0 }
  0x73   : > { %1767 = vmatmul.mubr.f32.vlgmr.msra.gmra.mrb[0].mxu0 %v2291_v6 }
  0x74   : > { %1800 = vmatpush3.msra.mxu0 %v2313_v18  ;;  %1801 = vmatprep.mubr.msk.f32.mxu0 %vm2094_vm0, %v2093_v0 }
  0x75   : > { %1804 = vmatprep.subr.mxu0 %v2093_v0 }
  0x77   : > { %1752 = vmatmul.mubr.f32.vlgmr.msra.gmra.mrb[0].mxu1 %v2294_v8  ;;  %1802 = vmatmul.mubr.f32.vlgmr.msra.gmra.mrb[2].mxu0 %v276_v16 }
  0x78   : > { %1770 = vmatpush3.msra.mxu1 %v656_v20  ;;  %1771 = vmatprep.mubr.msk.f32.mxu1 %vm2094_vm0, %v2093_v0 }
  0x79   : > { %1774 = vmatprep.subr.mxu1 %v2093_v0  ;;  %1805 = vmatpush3.msra.mxu0 %v1185_v27 }
  0x7a   : > { %1806 = vmatprep.mubr.msk.f32.mxu0 %vm2094_vm0, %v2093_v0  ;;  %1809 = vmatprep.subr.mxu0 %v2093_v0 }
  0x7b   : > { %1772 = vmatmul.mubr.f32.vlgmr.msra.gmra.mrb[2].mxu1 %v276_v16 }
  0x7c   : > { %1775 = vmatpush3.msra.mxu1 %v736_v28  ;;  %1776 = vmatprep.mubr.msk.f32.mxu1 %vm2094_vm0, %v2093_v0 }
  0x7d   : > { %1779 = vmatprep.subr.mxu1 %v2093_v0 }
  0x7f   : > { %1807 = vmatmul.mubr.f32.vlgmr.msra.gmra.mrb[2].mxu0 %v2291_v6 }
  0x80   : > { %1810 = vmatpush3.msra.mxu0 %v1182_v21  ;;  %1811 = vmatprep.mubr.msk.f32.mxu0 %vm2094_vm0, %v2093_v0 }
  0x81   : > { %1814 = vmatprep.subr.mxu0 %v2093_v0 }
  0x83   : > { %1777 = vmatmul.mubr.f32.vlgmr.msra.gmra.mrb[2].mxu1 %v2291_v6 }
  0x84   : > { %1780 = vmatpush3.msra.mxu1 %v733_v22  ;;  %1781 = vmatprep.mubr.msk.f32.mxu1 %vm2094_vm0, %v2093_v0 }
  0x85   : > { %1784 = vmatprep.subr.mxu1 %v2093_v0 }
  0x87   : > { %1812 = vmatmul.mubr.f32.vlgmr.msra.gmra.mrb[2].mxu0 %v2294_v8 }
  0x88   : > { %1815 = vmatpush3.msra.mxu0 %v2313_v18  ;;  %1816 = vmatprep.mubr.msk.f32.mxu0 %vm2094_vm0, %v2093_v0 }
  0x89   : > { %1819 = vmatprep.subr.mxu0 %v2093_v0 }
  0x8b   : > { %1782 = vmatmul.mubr.f32.vlgmr.msra.gmra.mrb[2].mxu1 %v2294_v8 }
  0x8c   : > { %1785 = vmatpush3.msra.mxu1 %v656_v20  ;;  %1786 = vmatprep.mubr.msk.f32.mxu1 %vm2094_vm0, %v2093_v0 }
  0x8d   : > { %1789 = vmatprep.subr.mxu1 %v2093_v0 }
  0x8f   : > { %1817 = vmatmul.mubr.f32.vlgmr.msra.gmra.mrb[2].mxu0 %v2301_v10 }
  0x90   : > { %1820 = vmatpush3.msra.mxu0 %v1183_v23  ;;  %1821 = vmatprep.mubr.msk.f32.mxu0 %vm2094_vm0, %v2093_v0 }
  0x91   : > { %1824 = vmatprep.subr.mxu0 %v2093_v0 }
  0x93   : > { %1787 = vmatmul.mubr.f32.vlgmr.msra.gmra.mrb[2].mxu1 %v2301_v10 }
  0x94   : > { %1790 = vmatpush3.msra.mxu1 %v734_v24  ;;  %1791 = vmatprep.mubr.msk.f32.mxu1 %vm2094_vm0, %v2093_v0 }
  0x95   : > { %1794 = vmatprep.subr.mxu1 %v2093_v0 }
  0x97   : > { %1822 = vmatmul.mubr.f32.vlgmr.msra.gmra.mrb[2].mxu0 %v2291_v6 }
  0x98   : > { %1825 = vmatpush3.msra.mxu0 %v2313_v18  ;;  %1826 = vmatprep.mubr.msk.f32.mxu0 %vm2094_vm0, %v2093_v0 }
  0x9b   : > { %1792 = vmatmul.mubr.f32.vlgmr.msra.gmra.mrb[2].mxu1 %v2291_v6 }
  0x9c   : > { %1795 = vmatpush3.msra.mxu1 %v656_v20  ;;  %1796 = vmatprep.mubr.msk.f32.mxu1 %vm2094_vm0, %v2093_v0 }
  0x9f   : > { %1827 = vmatmul.mubr.f32.vlgmr.msra.gmra.mrb[2].mxu0 %v2291_v6 }
  0xa3   : > { %1797 = vmatmul.mubr.f32.vlgmr.msra.gmra.mrb[2].mxu1 %v2291_v6 }
 0x146   : > { %v648_v29 = vpop.f32.mrb[0].mxu0 }
 0x147   : > { %v1768_v30 = vpop.f32.mrb[1].mxu0 }
 0x14a   : > { %v428_v31 = vpop.f32.mrb[0].mxu1 }
 0x14b   : > { %v1829_v32 = vadd.f32 %v648_v29, %v428_v31  ;;  %v1753_v33 = vpop.f32.mrb[1].mxu1 }
 0x14d   : > { %v1550_v37 = vmul.f32 %v1829_v32, %v2287_v1  ;;  %v1555_v38 = vmul.f32 %v1829_v32, %v1829_v32 }
 0x172   : > { %v1546_v34 = vpop.f32.mrb[2].mxu0 }
 0x173   : > { %v1828_v35 = vpop.f32.mrb[3].mxu0  ;;  %v1553_v42 = vmul.f32 %v2296_v9, %v1546_v34  ;;  %v1558_v43 = vmul.f32 %v1546_v34, %v1546_v34 }
 0x176   : > { %v1097_v36 = vpop.f32.mrb[2].mxu1 }
 0x177   : > { %v1551_v39 = vmul.f32 %v2305_v13, %v1097_v36  ;;  %v1556_v40 = vmul.f32 %v1097_v36, %v1097_v36  ;;  %v1798_v41 = vpop.f32.mrb[3].mxu1 }
 0x179   : > { %v1552_v44 = vadd.f32 %v1551_v39, %v1550_v37  ;;  %v1557_v45 = vadd.f32 %v1556_v40, %v1555_v38 }
 0x17b   : > { %v1554_v46 = vadd.f32 %v1553_v42, %v1552_v44  ;;  %v1559_v47 = vadd.f32 %v1558_v43, %v1557_v45 }
 0x17d   : > { %v1560_v48 = vadd.f32 1e-08, %v1559_v47  ;;  %vm1563_vm3 = vcmp.ge.f32.partialorder %v1554_v46, 0.0 }
 0x17f   : > { %1941 = vrcp.f32 %v1560_v48 }
 0x189   : > { %v1942_v49 = vpop.eup %1941 }
 0x18a   : > { %v1562_v50 = vmul.f32 %v1942_v49, %v1554_v46 }
 0x18c   : > { %v1564_v51 = vmul.f32 0.8, %v1562_v50 }
 0x18e   : > { %v1565_v52 = vsel %vm1563_vm3, 0.0, %v1564_v51 }
 0x18f   : > { %v1566_v53 = vmul.f32 %v1829_v32, %v1565_v52  ;;  %v1570_v54 = vmul.f32 %v1565_v52, %v1097_v36  ;;  %v1574_v55 = vmul.f32 %v1565_v52, %v1546_v34 }
 0x191   : > { %v1567_v56 = vsub.f32 %v2287_v1, %v1566_v53  ;;  %v1571_v57 = vsub.f32 %v2305_v13, %v1570_v54  ;;  %v1575_v58 = vsub.f32 %v2296_v9, %v1574_v55 }
 0x193   : > { %1569 = vst.msk [vmem:[%s191_s20] sm:$0xf] %vm1568_vm4, %v1567_v56  ;;  %1698 = vst.msk [vmem:[%s191_s20 + $0x4] sm:$0xf] %vm1568_vm4, %v1571_v57 }
 0x194   : > { %1699 = vst.msk [vmem:[%s191_s20 + $0x8] sm:$0xf] %vm1568_vm4, %v1575_v58 }
 0x195   : > { %2014 = shalt.err (!%p2011_p7)
}
 0x196   : > { %s2015_s27 = scalar_lea.hbm %s2387_s15, 192  ;;  %s2019_s16 = scalar_lea.hbm %s2443_s2, 384 }
 0x197   : > { %p2016_p13 = scmp.ne.s32.totalorder %s2387_s15, %s2015_s27  ;;  %p2020_p12 = scmp.lt.u32.totalorder %s2387_s15, %s2443_s2 }
 0x198   : > { %p2021_p4 = scmp.lt.u32.totalorder %s2019_s16, %s2015_s27  ;;  %p2023_p5 = scmp.lt.u32.totalorder %s2015_s27, %s2387_s15 }
 0x199   : > { %p2017_p2 = pnand %p2016_p13, %p2464_p10 }
 0x19a   : > { %p2022_p8 = por %p2021_p4, %p2020_p12 }
 0x19b   : > { %p2018_p6 = pneg %p2017_p2 }
 0x19c   : > { %p2024_p11 = por %p2023_p5, %p2022_p8 }
 0x19e   : > { %p2025_p1 = pnand %p2024_p11, %p2018_p6 }
 0x1a0   : > { %2028 = shalt.err (!%p2025_p1)
}
 0x1a1   : > { %s2096_s4 = smov 64   ;;  %s2097_s18 = smov 4  }
 0x1a2   : > { %1868 = dma.vmem_to_hbm [thread:$0]  (%p2464_p10), %s2389_s23, 192, %s2387_s15, %s1579_s12, %s2096_s4, %s2096_s4, %s2097_s18  }
 0x1a3 PF: > { %s1608_s20 = sand.u32 1, %s2067_s9   ;;  %p2465_p0 = scmp.ne.s32.totalorder %s2454_s22, 0 }
 0x1a4   : > { %p2466_p9 = scmp.ge.s32.totalorder %s2087_s14, 2  ;;  %s1609_s26 = scalar_lea.sflag [#allocation4], %s1608_s20 }
 0x1a6   : > { %p1879_p3 = pnand %p2466_p9, %p2465_p0 }
 0x1a8   : > { %2062 = dma.done.wait (!%p1879_p3), %s1609_s26, 192  }
 0x1a9   : > { %2064 = vsyncadd (!%p1879_p3), %s1609_s26, 4294967104  ;;  %s19_s14 = sadd.s32 1, %s2087_s14   ;;  %s2467_s9 = smov %s2071_s10 }
 0x1aa   : > { %p16_p7 = scmp.ge.s32.totalorder %s19_s14, 4   ;;  %s2468_s10 = smov %s2075_s11 }
 0x1ab   : > { %s2469_s11 = smov %s2232_s25  ;;  %s2470_s12 = smov %s2083_s13 }
 0x1ac   : > { %s2471_s13 = smov %s2473_s28  ;;  %18 = sbr.rel (!%p16_p7) target bundleno = 7 (0x7), region = 81 }
 0x1b3   :  { %1614 = vsyncpa [#allocation3], 1 }
 0x1b4   :  { %1616 = vsyncpa [#allocation3 + $0x1], 1 }
 0x1b5   :  { %1617 = vsyncpa [#allocation6], 1 }
 0x1b6   :  { %1618 = vsyncpa [#allocation4], 1 }
 0x1b7   :  { %1620 = vsyncpa [#allocation4 + $0x1], 1 }

</bundles_post_ra>
